<compile_context>
chip_gen: v7x
topology: tpu7x:2x2x1
jax: 0.10.0
libtpu: 0.0.40
codegen_flags: <defaults>
</compile_context>

<pallas_src>
import functools
import math

import jax
import jax.numpy as jnp
from jax.experimental import pallas as pl
from jax.experimental.pallas import tpu as pltpu


# ----------------------------------------------------------------------------
# Tiling helpers
# ----------------------------------------------------------------------------
def _round_up(x, m):
    return ((x + m - 1) // m) * m


def _pick_tile(dim, desired, aligns=(128,)):
    """Largest tile <= desired that divides `dim` and is a multiple of one of
    `aligns` (tried in order); falls back to the full dimension."""
    if dim <= desired:
        return dim
    for align in aligns:
        t = (desired // align) * align
        while t >= align:
            if dim % t == 0:
                return t
            t -= align
    # TODO(synk): for awkward dims, pad + cdiv grid instead of a full-dim block
    # (the full-dim fallback can overshoot vmem_limit_bytes for huge ragged T).
    return dim


def _pick_heads_per_block(n_head, head_dim):
    """Smallest head grouping whose combined lane width is 128-aligned."""
    for hpb in range(1, n_head + 1):
        if n_head % hpb == 0 and (hpb * head_dim) % 128 == 0:
            return hpb
    return None


# ----------------------------------------------------------------------------
# Kernel 1: tiled dense linear  y = x @ W + b   (c_attn and c_proj)
# ----------------------------------------------------------------------------
def _linear_kernel(x_ref, w_ref, b_ref, o_ref, acc_ref, *, mxu_dtype):
    # x_ref: (tm, tk), w_ref: (tk, tn), b_ref: (1, tn), o_ref: (tm, tn)
    k = pl.program_id(2)

    @pl.when(k == 0)
    def _():
        acc_ref[...] = jnp.zeros_like(acc_ref)

    # bf16 MXU operands (no-op if already bf16), f32 accumulation.
    acc_ref[...] += jnp.dot(
        x_ref[...].astype(mxu_dtype),
        w_ref[...].astype(mxu_dtype),
        preferred_element_type=jnp.float32,
    )

    @pl.when(k == pl.num_programs(2) - 1)
    def _():
        o_ref[...] = (acc_ref[...] + b_ref[...].astype(jnp.float32)).astype(
            o_ref.dtype
        )


def pallas_linear(x2d, w, b, *, tm=1024, tn=1024, tk=512,
                  mxu_dtype=jnp.bfloat16, vmem_limit=48 * 1024 * 1024):
    m, kdim = x2d.shape
    n = w.shape[1]

    # 16-sublane-aligned M tile (bf16 packing); pad M rather than falling back
    # to a single full-M block (which could blow the VMEM cap for large B*T).
    tm = min(tm, _round_up(m, 16))
    m_pad = _round_up(m, tm)
    if m_pad != m:
        x2d = jnp.pad(x2d, ((0, m_pad - m), (0, 0)))

    tn = _pick_tile(n, tn, aligns=(128,))
    tk = _pick_tile(kdim, tk, aligns=(128,))
    grid = (m_pad // tm, n // tn, kdim // tk)   # reduction axis last

    out = pl.pallas_call(
        functools.partial(_linear_kernel, mxu_dtype=mxu_dtype),
        out_shape=jax.ShapeDtypeStruct((m_pad, n), x2d.dtype),
        grid_spec=pltpu.PrefetchScalarGridSpec(
            num_scalar_prefetch=0,
            grid=grid,
            in_specs=[
                pl.BlockSpec((tm, tk), lambda i, j, kk: (i, kk)),
                pl.BlockSpec((tk, tn), lambda i, j, kk: (kk, j)),
                pl.BlockSpec((1, tn), lambda i, j, kk: (0, j)),
            ],
            out_specs=pl.BlockSpec((tm, tn), lambda i, j, kk: (i, j)),
            scratch_shapes=[pltpu.VMEM((tm, tn), jnp.float32)],
        ),
        compiler_params=pltpu.CompilerParams(
            dimension_semantics=("parallel", "parallel", "arbitrary"),
            vmem_limit_bytes=vmem_limit,
        ),
    )(x2d, w, b.reshape(1, n))
    return out[:m] if m_pad != m else out


# ----------------------------------------------------------------------------
# Kernel 2: flash causal attention on the fused qkv buffer
#   grid = (B, n_head // hpb, n_causal_pairs)   (pair axis is "arbitrary")
#   q/k/v blocks are column windows of the (B, T, 3C) qkv activation,
#   the output is written directly in (B, T, C) layout (no head transposes).
# ----------------------------------------------------------------------------
def _flash_attn_kernel(qi_ref, ki_ref, first_ref, last_ref, mask_ref,
                       q_ref, k_ref, v_ref, o_ref,
                       m_ref, l_ref, acc_ref,
                       *, scale, hpb, hd, q_off, k_off, v_off,
                       tq, tkv, mxu_dtype, approx_recip):
    p = pl.program_id(2)
    qi = qi_ref[p]
    ki = ki_ref[p]

    @pl.when(first_ref[p] == 1)
    def _():
        m_ref[...] = jnp.full_like(m_ref, -jnp.inf)
        l_ref[...] = jnp.zeros_like(l_ref)
        acc_ref[...] = jnp.zeros_like(acc_ref)

    def online_softmax_update(apply_mask):
        if apply_mask:
            row = qi * tq + jax.lax.broadcasted_iota(jnp.int32, (tq, tkv), 0)
            col = ki * tkv + jax.lax.broadcasted_iota(jnp.int32, (tq, tkv), 1)
            visible = col <= row
        for hi in range(hpb):
            qs, ks, vs = q_off + hi * hd, k_off + hi * hd, v_off + hi * hd
            # fold 1/sqrt(hd) into q (tq*hd work instead of tq*tkv)
            q = (q_ref[0, :, qs:qs + hd] * scale).astype(mxu_dtype)
            k = k_ref[0, :, ks:ks + hd].astype(mxu_dtype)
            # contract last dims directly -> no transposed copy of k
            s = jax.lax.dot_general(
                q, k, (((1,), (1,)), ((), ())),
                preferred_element_type=jnp.float32)              # (tq, tkv)
            if apply_mask:
                s = jnp.where(visible, s, -jnp.inf)
            m_prev = m_ref[hi]                                   # (tq, 1)
            m_new = jnp.maximum(m_prev, jnp.max(s, axis=-1, keepdims=True))
            alpha = jnp.exp(m_prev - m_new)
            prob = jnp.exp(s - m_new)                            # (tq, tkv)
            l_ref[hi] = alpha * l_ref[hi] + jnp.sum(prob, axis=-1, keepdims=True)
            pv = jax.lax.dot_general(
                prob.astype(mxu_dtype),
                v_ref[0, :, vs:vs + hd].astype(mxu_dtype),
                (((1,), (0,)), ((), ())),
                preferred_element_type=jnp.float32)              # (tq, hd)
            acc_ref[:, hi * hd:(hi + 1) * hd] = (
                alpha * acc_ref[:, hi * hd:(hi + 1) * hd] + pv)
            m_ref[hi] = m_new

    # Only diagonal-straddling tiles pay for the iota/compare/select mask;
    # interior (fully visible) tiles take the unmasked branch.
    @pl.when(mask_ref[p] == 1)
    def _():
        online_softmax_update(apply_mask=True)

    @pl.when(mask_ref[p] == 0)
    def _():
        online_softmax_update(apply_mask=False)

    @pl.when(last_ref[p] == 1)
    def _():
        for hi in range(hpb):
            if approx_recip:
                inv = pl.reciprocal(l_ref[hi], approx=True)
            else:
                inv = 1.0 / l_ref[hi]
            o_ref[0, :, hi * hd:(hi + 1) * hd] = (
                acc_ref[:, hi * hd:(hi + 1) * hd] * inv).astype(o_ref.dtype)


def _causal_pairs(t, tq, tkv):
    """Compacted list of lower-triangular (qi, ki) tile pairs plus flags."""
    nq, nk = t // tq, t // tkv
    qi_l, ki_l, first_l, last_l, mask_l = [], [], [], [], []
    for qi in range(nq):
        last_ki = min(nk - 1, (qi * tq + tq - 1) // tkv)
        for ki in range(last_ki + 1):
            qi_l.append(qi)
            ki_l.append(ki)
            first_l.append(1 if ki == 0 else 0)
            last_l.append(1 if ki == last_ki else 0)
            # tile needs masking iff it straddles the diagonal
            mask_l.append(1 if ki * tkv + tkv - 1 > qi * tq else 0)
    to_i32 = lambda a: jnp.asarray(a, dtype=jnp.int32)
    return to_i32(qi_l), to_i32(ki_l), to_i32(first_l), to_i32(last_l), to_i32(mask_l)


def pallas_flash_attention(qkv, n_head, head_dim, *, tq=512, tkv=1024,
                           mxu_dtype=jnp.bfloat16,
                           vmem_limit=48 * 1024 * 1024):
    """qkv: (B, T, 3C) fused activation; returns (B, T, C) attention output."""
    bsz, t, three_c = qkv.shape
    c = n_head * head_dim
    assert three_c == 3 * c
    scale = 1.0 / math.sqrt(head_dim)

    tq = _pick_tile(t, tq, aligns=(16, 8))
    tkv = _pick_tile(t, tkv, aligns=(16, 8))
    qi_t, ki_t, first_t, last_t, mask_t = _causal_pairs(t, tq, tkv)
    n_pairs = int(qi_t.shape[0])

    hpb = _pick_heads_per_block(n_head, head_dim)
    if hpb is not None:
        # Fast path: lane-aligned head grouping (hpb*hd % 128 == 0).  Each grid
        # step loads one 128k-wide column window of qkv for q, k, v.
        nhb = n_head // hpb
        bw = hpb * head_dim
        q_block, kv_block, o_block = (1, tq, bw), (1, tkv, bw), (1, tq, bw)
        q_map = lambda b, h, p, qi, ki, f, l, m: (b, qi[p], h)
        k_map = lambda b, h, p, qi, ki, f, l, m: (b, ki[p], nhb + h)
        v_map = lambda b, h, p, qi, ki, f, l, m: (b, ki[p], 2 * nhb + h)
        o_map = lambda b, h, p, qi, ki, f, l, m: (b, qi[p], h)
        offs = (0, 0, 0)
    else:
        # Fallback (head_dim not 128-alignable): load full-width rows (legal
        # because the block last dim equals the full array last dim) and slice
        # heads inside the kernel.  Only hit for small C.
        hpb, nhb = n_head, 1
        q_block, kv_block, o_block = (1, tq, 3 * c), (1, tkv, 3 * c), (1, tq, c)
        q_map = lambda b, h, p, qi, ki, f, l, m: (b, qi[p], 0)
        k_map = lambda b, h, p, qi, ki, f, l, m: (b, ki[p], 0)
        v_map = lambda b, h, p, qi, ki, f, l, m: (b, ki[p], 0)
        o_map = lambda b, h, p, qi, ki, f, l, m: (b, qi[p], 0)
        offs = (0, c, 2 * c)

    kernel = functools.partial(
        _flash_attn_kernel, scale=scale, hpb=hpb, hd=head_dim,
        q_off=offs[0], k_off=offs[1], v_off=offs[2], tq=tq, tkv=tkv,
        mxu_dtype=mxu_dtype, approx_recip=(qkv.dtype != jnp.float32))

    # TODO(synk): optional fp8 QK/PV operands for v7x and pl.Buffered(3) on the
    # K/V specs if the KV DMA ever becomes exposed at very large tkv.
    return pl.pallas_call(
        kernel,
        out_shape=jax.ShapeDtypeStruct((bsz, t, c), qkv.dtype),
        grid_spec=pltpu.PrefetchScalarGridSpec(
            num_scalar_prefetch=5,
            grid=(bsz, nhb, n_pairs),
            in_specs=[
                pl.BlockSpec(q_block, q_map),
                pl.BlockSpec(kv_block, k_map),
                pl.BlockSpec(kv_block, v_map),
            ],
            out_specs=pl.BlockSpec(o_block, o_map),
            scratch_shapes=[
                pltpu.VMEM((hpb, tq, 1), jnp.float32),            # running max
                pltpu.VMEM((hpb, tq, 1), jnp.float32),            # running denom
                pltpu.VMEM((tq, hpb * head_dim), jnp.float32),    # out accumulator
            ],
        ),
        compiler_params=pltpu.CompilerParams(
            dimension_semantics=("parallel", "parallel", "arbitrary"),
            vmem_limit_bytes=vmem_limit,
        ),
    )(qi_t, ki_t, first_t, last_t, mask_t, qkv, qkv, qkv)


# ----------------------------------------------------------------------------
# Module wrapper: CausalSelfAttention forward
# ----------------------------------------------------------------------------
def causal_self_attention(x, params, n_head, *, compute_dtype=None,
                          mxu_dtype=jnp.bfloat16,
                          lin_block=(1024, 1024, 512),
                          attn_block=(512, 1024),
                          vmem_limit_bytes=48 * 1024 * 1024):
    # TODO(synk): per-generation retuning — v6e wants tm~tn~768-1024, v7x
    # ~384-512 with parallel grid extents >= 2 for its two TensorCores, and
    # v5e/v6e may raise vmem_limit_bytes above 48 MiB.
    bsz, t, c = x.shape
    hd = c // n_head

    if compute_dtype is not None:
        x = x.astype(compute_dtype)
        params = {kk: vv.astype(compute_dtype) for kk, vv in params.items()}

    tm, tn, tk = lin_block
    qkv = pallas_linear(x.reshape(bsz * t, c), params["w_attn"],
                        params["b_attn"], tm=tm, tn=tn, tk=tk,
                        mxu_dtype=mxu_dtype, vmem_limit=vmem_limit_bytes)
    # (B*T, 3C) -> (B, T, 3C) is a pure reshape; heads stay packed along lanes.
    qkv = qkv.reshape(bsz, t, 3 * c)

    # Flash attention reads q/k/v straight out of the fused buffer and emits
    # the (B, T, C) layout that c_proj consumes -> no XLA head transposes.
    y = pallas_flash_attention(qkv, n_head, hd, tq=attn_block[0],
                               tkv=attn_block[1], mxu_dtype=mxu_dtype,
                               vmem_limit=vmem_limit_bytes)

    y = pallas_linear(y.reshape(bsz * t, c), params["w_proj"], params["b_proj"],
                      tm=tm, tn=tn, tk=tk, mxu_dtype=mxu_dtype,
                      vmem_limit=vmem_limit_bytes)
    return y.reshape(bsz, t, c)


# ----------------------------------------------------------------------------
# Pure-JAX reference for correctness check
# ----------------------------------------------------------------------------
def reference(x, params, n_head):
    bsz, t, c = x.shape
    hd = c // n_head
    qkv = x.reshape(bsz * t, c) @ params["w_attn"] + params["b_attn"]
    qkv = qkv.reshape(bsz, t, 3 * c)
    q, k, v = jnp.split(qkv, 3, axis=2)
    q = q.reshape(bsz, t, n_head, hd).transpose(0, 2, 1, 3)
    k = k.reshape(bsz, t, n_head, hd).transpose(0, 2, 1, 3)
    v = v.reshape(bsz, t, n_head, hd).transpose(0, 2, 1, 3)
    s = jnp.einsum("bhqd,bhkd->bhqk", q, k) / math.sqrt(hd)
    mask = jnp.tril(jnp.ones((t, t), dtype=bool))
    s = jnp.where(mask, s, -jnp.inf)
    p = jax.nn.softmax(s, axis=-1)
    y = jnp.einsum("bhqk,bhkd->bhqd", p, v)
    y = y.transpose(0, 2, 1, 3).reshape(bsz * t, c)
    y = y @ params["w_proj"] + params["b_proj"]
    return y.reshape(bsz, t, c)


if __name__ == "__main__":
    def make_params(key, n_embd):
        k1, k2, k3, k4 = jax.random.split(key, 4)
        s = 1.0 / math.sqrt(n_embd)
        return {
            "w_attn": jax.random.uniform(k1, (n_embd, 3 * n_embd), jnp.float32, -s, s),
            "b_attn": jax.random.uniform(k2, (3 * n_embd,), jnp.float32, -s, s),
            "w_proj": jax.random.uniform(k3, (n_embd, n_embd), jnp.float32, -s, s),
            "b_proj": jax.random.uniform(k4, (n_embd,), jnp.float32, -s, s),
        }

    root = jax.random.PRNGKey(0)
    kp1, kx1, kp2, kx2, kp3, kx3 = jax.random.split(root, 6)

    # --- test 1: lane-aligned fast path (hd=64 -> hpb=2), single-tile grids.
    #     (bf16 MXU operands -> compare to f32 reference with loose tolerance)
    batch, seq, n_embd, n_head = 2, 16, 256, 4
    params1 = make_params(kp1, n_embd)
    x1 = jax.random.normal(kx1, (batch, seq, n_embd), jnp.float32)
    out1 = jax.block_until_ready(causal_self_attention(x1, params1, n_head))
    ref1 = reference(x1, params1, n_head)
    assert out1.shape == (batch, seq, n_embd)
    assert jnp.allclose(out1, ref1, atol=3e-2, rtol=3e-2), "aligned path mismatch"

    # --- test 2: multi-tile grids exercising the compacted causal pair table
    #     (masked + unmasked branches), the K-reduction grid and M padding.
    batch2, seq2 = 2, 64
    params2 = make_params(kp2, n_embd)
    x2 = jax.random.normal(kx2, (batch2, seq2, n_embd), jnp.float32)
    out2 = jax.block_until_ready(
        causal_self_attention(x2, params2, n_head,
                              lin_block=(48, 128, 128), attn_block=(16, 32)))
    ref2 = reference(x2, params2, n_head)
    assert out2.shape == (batch2, seq2, n_embd)
    assert jnp.allclose(out2, ref2, atol=3e-2, rtol=3e-2), "tiled path mismatch"

    # --- test 3: bf16 activations/weights end-to-end.
    out3 = jax.block_until_ready(
        causal_self_attention(x1, params1, n_head, compute_dtype=jnp.bfloat16))
    assert jnp.allclose(out3.astype(jnp.float32), ref1, atol=6e-2, rtol=6e-2), \
        "bf16 mismatch"

    # --- test 4: non-lane-alignable head_dim (hd=8) -> full-width fallback path.
    batch4, seq4, n_embd4, n_head4 = 2, 16, 32, 4
    params4 = make_params(kp3, n_embd4)
    x4 = jax.random.normal(kx3, (batch4, seq4, n_embd4), jnp.float32)
    out4 = jax.block_until_ready(causal_self_attention(x4, params4, n_head4))
    ref4 = reference(x4, params4, n_head4)
    assert jnp.allclose(out4, ref4, atol=3e-2, rtol=3e-2), "fallback path mismatch"

    print("KERNEL_OK")
</pallas_src>

<mosaic_0001>
module attributes {stable_mosaic.version = 11 : i64} {
  func.func @_linear_kernel(%arg0: i32, %arg1: i32, %arg2: i32, %arg3: memref<32x256xf32, #tpu.memory_space<vmem>>, %arg4: memref<256x768xf32, #tpu.memory_space<vmem>>, %arg5: memref<1x768xf32, #tpu.memory_space<vmem>>, %arg6: memref<32x768xf32, #tpu.memory_space<vmem>>, %arg7: memref<32x768xf32, #tpu.memory_space<vmem>>) attributes {dimension_semantics = [#tpu.dimension_semantics<parallel>, #tpu.dimension_semantics<parallel>, #tpu.dimension_semantics<arbitrary>], iteration_bounds = array<i64: 1, 1, 1>, scalar_prefetch = 0 : i64, scratch_operands = 1 : i64, tpu.core_type = #tpu.core_type<tc>, window_params = [{transform_indices = @transform_0, window_bounds = array<i64: 32, 256>}, {transform_indices = @transform_1, window_bounds = array<i64: 256, 768>}, {transform_indices = @transform_2, window_bounds = array<i64: 1, 768>}, {transform_indices = @transform_3, window_bounds = array<i64: 32, 768>}]} {
    %c0_i32 = arith.constant 0 : i32
    %0 = arith.cmpi eq, %arg2, %c0_i32 : i32
    %1 = arith.extui %0 : i1 to i32
    %c0_i32_0 = arith.constant 0 : i32
    %2 = arith.cmpi ne, %1, %c0_i32_0 : i32
    scf.if %2 {
      %cst_10 = arith.constant 0.000000e+00 : f32
      %14 = vector.broadcast %cst_10 : f32 to vector<32x768xf32>
      %c0_11 = arith.constant 0 : index
      %c0_12 = arith.constant 0 : index
      %15 = vector.load %arg7[%c0_11, %c0_12] : memref<32x768xf32, #tpu.memory_space<vmem>>, vector<32x768xf32>
      tpu.vector_store %arg7[%c0_11, %c0_12], %14 {strides = array<i32>} : memref<32x768xf32, #tpu.memory_space<vmem>>, vector<32x768xf32>,
    } else {
    }
    %c0 = arith.constant 0 : index
    %c0_1 = arith.constant 0 : index
    %3 = vector.load %arg7[%c0, %c0_1] : memref<32x768xf32, #tpu.memory_space<vmem>>, vector<32x768xf32>
    %c0_2 = arith.constant 0 : index
    %c0_3 = arith.constant 0 : index
    %4 = vector.load %arg3[%c0_2, %c0_3] : memref<32x256xf32, #tpu.memory_space<vmem>>, vector<32x256xf32>
    %5 = arith.truncf %4 : vector<32x256xf32> to vector<32x256xbf16>
    %c0_4 = arith.constant 0 : index
    %c0_5 = arith.constant 0 : index
    %6 = vector.load %arg4[%c0_4, %c0_5] : memref<256x768xf32, #tpu.memory_space<vmem>>, vector<256x768xf32>
    %7 = arith.truncf %6 : vector<256x768xf32> to vector<256x768xbf16>
    %cst = arith.constant dense<0.000000e+00> : vector<32x768xf32>
    %8 = tpu.matmul %5, %7, %cst {dimension_numbers = #tpu.dot_dimension_numbers<[1], [0], [0], [1], [0, 0, 1, 1], [], []>} : vector<32x256xbf16>, vector<256x768xbf16>, vector<32x768xf32> -> vector<32x768xf32>
    %9 = arith.addf %3, %8 : vector<32x768xf32>
    %c0_6 = arith.constant 0 : index
    %c0_7 = arith.constant 0 : index
    %10 = vector.load %arg7[%c0_6, %c0_7] : memref<32x768xf32, #tpu.memory_space<vmem>>, vector<32x768xf32>
    tpu.vector_store %arg7[%c0_6, %c0_7], %9 {strides = array<i32>} : memref<32x768xf32, #tpu.memory_space<vmem>>, vector<32x768xf32>,
    %c0_i32_8 = arith.constant 0 : i32
    %11 = arith.cmpi eq, %arg2, %c0_i32_8 : i32
    %12 = arith.extui %11 : i1 to i32
    %c0_i32_9 = arith.constant 0 : i32
    %13 = arith.cmpi ne, %12, %c0_i32_9 : i32
    scf.if %13 {
      %c0_10 = arith.constant 0 : index
      %c0_11 = arith.constant 0 : index
      %14 = vector.load %arg7[%c0_10, %c0_11] : memref<32x768xf32, #tpu.memory_space<vmem>>, vector<32x768xf32>
      %c0_12 = arith.constant 0 : index
      %c0_13 = arith.constant 0 : index
      %15 = vector.load %arg5[%c0_12, %c0_13] : memref<1x768xf32, #tpu.memory_space<vmem>>, vector<1x768xf32>
      %16 = vector.broadcast %15 : vector<1x768xf32> to vector<32x768xf32>
      %17 = arith.addf %14, %16 : vector<32x768xf32>
      %c0_14 = arith.constant 0 : index
      %c0_15 = arith.constant 0 : index
      %18 = vector.load %arg6[%c0_14, %c0_15] : memref<32x768xf32, #tpu.memory_space<vmem>>, vector<32x768xf32>
      tpu.vector_store %arg6[%c0_14, %c0_15], %17 {strides = array<i32>} : memref<32x768xf32, #tpu.memory_space<vmem>>, vector<32x768xf32>,
    } else {
    }
    return
  }
  func.func @transform_0(%arg0: i32, %arg1: i32, %arg2: i32) -> (i32, i32) {
    %c0_i32 = arith.constant 0 : i32
    return %arg0, %arg2 : i32, i32
  }
  func.func @transform_1(%arg0: i32, %arg1: i32, %arg2: i32) -> (i32, i32) {
    %c0_i32 = arith.constant 0 : i32
    return %arg2, %arg1 : i32, i32
  }
  func.func @transform_2(%arg0: i32, %arg1: i32, %arg2: i32) -> (i32, i32) {
    %c0_i32 = arith.constant 0 : i32
    %c0_i32_0 = arith.constant 0 : i32
    return %c0_i32, %arg1 : i32, i32
  }
  func.func @transform_3(%arg0: i32, %arg1: i32, %arg2: i32) -> (i32, i32) {
    %c0_i32 = arith.constant 0 : i32
    return %arg0, %arg1 : i32, i32
  }
}

</mosaic_0001>

<bundles_post_ra>
// kernel: tpu_custom_call.1
= control target key start
LH: loop header
LB: loop body
LE: loop exit
PB: predicated region body
PF: predicated region fallthrough
CT: control target
= control target key end

     0   :  { %8 = vsyncpa [#allocation4], 0  ;;  %s937_s0 = inlined_call_operand.hbm [shape: f32[32,256], index: 0, kind: input, shape index: {}]   ;;  %s938_s1 = inlined_call_operand.hbm [shape: f32[256,768], index: 1, kind: input, shape index: {}]   ;;  %s939_s2 = inlined_call_operand.vmem [shape: f32[1,768], index: 2, kind: input, shape index: {}]   ;;  %s940_s3 = inlined_call_operand.hbm [shape: f32[32,768], index: 3, kind: output, shape index: {}]  }
   0x1   :  { %9 = vsyncpa [#allocation7], 0 }
   0x2   :  { %10 = vsyncpa [#allocation5], 0  ;;  %s838_s12 = smov [#allocation3]   ;;  %s766_s16 = scalar_lea.hbm %s937_s0, 1024 }
   0x3   :  { %s16_s13 = sshll.u32 %s838_s12, 4  ;;  %p767_p0 = scmp.ne.s32.totalorder %s937_s0, %s766_s16  ;;  %s17_s13 = int_to_ptr.vmem [resolvable:$true] %s16_s13 }
   0x4   :  { %p770_p1 = scmp.lt.u32.totalorder %s766_s16, %s937_s0 }
   0x6   :  { %p772_p2 = pnand %p770_p1, %p767_p0 }
   0x8   :  { %775 = shalt.err (!%p772_p2)
}
   0x9   :  { %s776_s21 = scalar_lea.vmem %s17_s13, 1024  ;;  %p781_p4 = scmp.lt.s32.totalorder %s17_s13, %s17_s13 }
   0xa   :  { %p777_p3 = scmp.ne.s32.totalorder %s17_s13, %s776_s21  ;;  %p782_p5 = scmp.lt.s32.totalorder %s776_s21, %s776_s21 }
   0xc   :  { %p783_p6 = por %p782_p5, %p781_p4 }
   0xe   :  { %p784_p7 = pnand %p783_p6, %p777_p3 }
  0x10   :  { %787 = shalt.err (!%p784_p7)
}
  0x11   :  { %s839_s22 = smov 256   ;;  %s840_s23 = smov 16  }
  0x12   :  { %22 = dma.hbm_to_vmem [thread:$0]  %s937_s0, 1024, %s17_s13, [#allocation4], %s839_s22, %s839_s22, %s840_s23  }
  0x13   :  { %s841_s26 = smov [#allocation6]   ;;  %s788_s30 = scalar_lea.hbm %s938_s1, 24576 }
  0x14   :  { %s28_s27 = sshll.u32 %s841_s26, 4  ;;  %p789_p8 = scmp.ne.s32.totalorder %s938_s1, %s788_s30  ;;  %s29_s27 = int_to_ptr.vmem [resolvable:$true] %s28_s27 }
  0x15   :  { %p792_p9 = scmp.lt.u32.totalorder %s788_s30, %s938_s1 }
  0x17   :  { %p794_p10 = pnand %p792_p9, %p789_p8 }
  0x19   :  { %797 = shalt.err (!%p794_p10)
}
  0x1a   :  { %s798_s8 = scalar_lea.vmem %s29_s27, 24576  ;;  %p803_p12 = scmp.lt.s32.totalorder %s29_s27, %s29_s27 }
  0x1b   :  { %p799_p11 = scmp.ne.s32.totalorder %s29_s27, %s798_s8  ;;  %p804_p13 = scmp.lt.s32.totalorder %s798_s8, %s798_s8 }
  0x1d   :  { %p805_p0 = por %p804_p13, %p803_p12 }
  0x1f   :  { %p806_p1 = pnand %p805_p0, %p799_p11 }
  0x21   :  { %809 = shalt.err (!%p806_p1)
}
  0x22   :  { %s842_s0 = smov 768   ;;  %s843_s9 = smov 48  }
  0x23   :  { %34 = dma.hbm_to_vmem [thread:$0]  %s938_s1, 24576, %s29_s27, [#allocation7], %s842_s0, %s842_s0, %s843_s9  }
  0x24   :  { %832 = dma.done.wait [#allocation4], 1024  }
  0x25   :  { %833 = vsyncadd [#allocation4], 4294966272 }
  0x26   :  { %834 = dma.done.wait [#allocation7], 24576  }
  0x27   :  { %835 = vsyncadd [#allocation7], 4294942720  ;;  %v108_v0 = vld [vmem:[#allocation6 + $0x8] sm:$0xff]  ;;  %v114_v1 = vld [vmem:[#allocation6 + $0x38] sm:$0xff] }
  0x28   :  { %v110_v2 = vld [vmem:[#allocation6 + $0x18] sm:$0xff]  ;;  %v300_v3 = vpack.c.bf16 %v114_v1, %v108_v0  ;;  %v116_v4 = vld [vmem:[#allocation6 + $0x48] sm:$0xff]  ;;  %v107_v5 = vld [vmem:[#allocation6] sm:$0xff] }
  0x29   :  { %v113_v6 = vld [vmem:[#allocation6 + $0x30] sm:$0xff]  ;;  %v302_v7 = vpack.c.bf16 %v116_v4, %v110_v2  ;;  %v115_v10 = vld [vmem:[#allocation6 + $0x40] sm:$0xff]  ;;  %v120_v11 = vld [vmem:[#allocation6 + $0x68] sm:$0xff] }
  0x2a   :  { %v299_v8 = vpack.c.bf16 %v113_v6, %v107_v5  ;;  %v109_v9 = vld [vmem:[#allocation6 + $0x10] sm:$0xff]  ;;  %395 = vmatprep.subr.bf16.mxu0 %v300_v3  ;;  %v126_v13 = vld [vmem:[#allocation6 + $0x98] sm:$0xff]  ;;  %v128_v15 = vld [vmem:[#allocation6 + $0xa8] sm:$0xff] }
  0x2b   :  { %v301_v12 = vpack.c.bf16 %v115_v10, %v109_v9  ;;  %v122_v14 = vld [vmem:[#allocation6 + $0x78] sm:$0xff]  ;;  %448 = vmatprep.subr.bf16.mxu1 %v302_v7  ;;  %v306_v16 = vpack.c.bf16 %v126_v13, %v120_v11  ;;  %v119_v18 = vld [vmem:[#allocation6 + $0x60] sm:$0xff]  ;;  %v125_v19 = vld [vmem:[#allocation6 + $0x90] sm:$0xff] }
  0x2c   :  { %396 = vmatpush1.bf16.msra.mxu0 %v299_v8  ;;  %v308_v17 = vpack.c.bf16 %v128_v15, %v122_v14  ;;  %v121_v20 = vld [vmem:[#allocation6 + $0x70] sm:$0xff]  ;;  %v305_v21 = vpack.c.bf16 %v125_v19, %v119_v18  ;;  %v127_v22 = vld [vmem:[#allocation6 + $0xa0] sm:$0xff]  ;;  %v132_v23 = vld [vmem:[#allocation6 + $0xc8] sm:$0xff] }
  0x2d   :  { %449 = vmatpush1.bf16.msra.mxu1 %v301_v12  ;;  %v138_v24 = vld [vmem:[#allocation6 + $0xf8] sm:$0xff]  ;;  %397 = vmatprep.subr.bf16.mxu0 %v306_v16  ;;  %v307_v25 = vpack.c.bf16 %v127_v22, %v121_v20  ;;  %v140_v28 = vld [vmem:[#allocation6 + $0x108] sm:$0xff]  ;;  %v131_v29 = vld [vmem:[#allocation6 + $0xc0] sm:$0xff] }
  0x2e   :  { %450 = vmatprep.subr.bf16.mxu1 %v308_v17  ;;  %v312_v26 = vpack.c.bf16 %v138_v24, %v132_v23  ;;  %v134_v27 = vld [vmem:[#allocation6 + $0xd8] sm:$0xff]  ;;  %v137_v31 = vld [vmem:[#allocation6 + $0xf0] sm:$0xff]  ;;  %v139_v33 = vld [vmem:[#allocation6 + $0x100] sm:$0xff] }
  0x2f   :  { %v314_v30 = vpack.c.bf16 %v140_v28, %v134_v27  ;;  %v133_v32 = vld [vmem:[#allocation6 + $0xd0] sm:$0xff]  ;;  %v311_v34 = vpack.c.bf16 %v137_v31, %v131_v29  ;;  %v144_v35 = vld [vmem:[#allocation6 + $0x128] sm:$0xff]  ;;  %v150_v36 = vld [vmem:[#allocation6 + $0x158] sm:$0xff] }
  0x30   :  { %398 = vmatpush1.bf16.msra.mxu0 %v305_v21  ;;  %v146_v37 = vld [vmem:[#allocation6 + $0x138] sm:$0xff]  ;;  %v313_v38 = vpack.c.bf16 %v139_v33, %v133_v32  ;;  %v318_v39 = vpack.c.bf16 %v150_v36, %v144_v35  ;;  %v152_v40 = vld [vmem:[#allocation6 + $0x168] sm:$0xff]  ;;  %v143_v41 = vld [vmem:[#allocation6 + $0x120] sm:$0xff] }
  0x31   :  { %451 = vmatpush1.bf16.msra.mxu1 %v307_v25  ;;  %399 = vmatprep.subr.bf16.mxu0 %v312_v26  ;;  %v149_v42 = vld [vmem:[#allocation6 + $0x150] sm:$0xff]  ;;  %v320_v43 = vpack.c.bf16 %v152_v40, %v146_v37  ;;  %v151_v45 = vld [vmem:[#allocation6 + $0x160] sm:$0xff]  ;;  %v156_v46 = vld [vmem:[#allocation6 + $0x188] sm:$0xff] }
  0x32   :  { %452 = vmatprep.subr.bf16.mxu1 %v314_v30  ;;  %v145_v44 = vld [vmem:[#allocation6 + $0x130] sm:$0xff]  ;;  %v162_v47 = vld [vmem:[#allocation6 + $0x1b8] sm:$0xff]  ;;  %v164_v49 = vld [vmem:[#allocation6 + $0x1c8] sm:$0xff]  ;;  %v317_v50 = vpack.c.bf16 %v149_v42, %v143_v41 }
  0x33   :  { %v158_v48 = vld [vmem:[#allocation6 + $0x198] sm:$0xff]  ;;  %v319_v51 = vpack.c.bf16 %v151_v45, %v145_v44  ;;  %v324_v52 = vpack.c.bf16 %v162_v47, %v156_v46  ;;  %v155_v53 = vld [vmem:[#allocation6 + $0x180] sm:$0xff]  ;;  %v161_v54 = vld [vmem:[#allocation6 + $0x1b0] sm:$0xff] }
  0x34   :  { %400 = vmatpush1.bf16.msra.mxu0 %v311_v34  ;;  %v157_v55 = vld [vmem:[#allocation6 + $0x190] sm:$0xff]  ;;  %v326_v56 = vpack.c.bf16 %v164_v49, %v158_v48  ;;  %v163_v57 = vld [vmem:[#allocation6 + $0x1c0] sm:$0xff]  ;;  %v168_v58 = vld [vmem:[#allocation6 + $0x1e8] sm:$0xff]  ;;  %v323_v62 = vpack.c.bf16 %v161_v54, %v155_v53 }
  0x35   :  { %453 = vmatpush1.bf16.msra.mxu1 %v313_v38  ;;  %401 = vmatprep.subr.bf16.mxu0 %v318_v39  ;;  %v174_v59 = vld [vmem:[#allocation6 + $0x218] sm:$0xff]  ;;  %v176_v61 = vld [vmem:[#allocation6 + $0x228] sm:$0xff]  ;;  %v325_v63 = vpack.c.bf16 %v163_v57, %v157_v55  ;;  %v167_v1 = vld [vmem:[#allocation6 + $0x1e0] sm:$0xff] }
  0x36   :  { %454 = vmatprep.subr.bf16.mxu1 %v320_v43  ;;  %v170_v60 = vld [vmem:[#allocation6 + $0x1f8] sm:$0xff]  ;;  %v330_v0 = vpack.c.bf16 %v174_v59, %v168_v58  ;;  %v173_v2 = vld [vmem:[#allocation6 + $0x210] sm:$0xff]  ;;  %v175_v5 = vld [vmem:[#allocation6 + $0x220] sm:$0xff] }
  0x37   :  { %v169_v3 = vld [vmem:[#allocation6 + $0x1f0] sm:$0xff]  ;;  %v332_v4 = vpack.c.bf16 %v176_v61, %v170_v60  ;;  %v180_v6 = vld [vmem:[#allocation6 + $0x248] sm:$0xff]  ;;  %v186_v7 = vld [vmem:[#allocation6 + $0x278] sm:$0xff]  ;;  %v329_v10 = vpack.c.bf16 %v173_v2, %v167_v1 }
  0x38   :  { %402 = vmatpush1.bf16.msra.mxu0 %v317_v50  ;;  %v182_v8 = vld [vmem:[#allocation6 + $0x258] sm:$0xff]  ;;  %v188_v9 = vld [vmem:[#allocation6 + $0x288] sm:$0xff]  ;;  %v331_v11 = vpack.c.bf16 %v175_v5, %v169_v3  ;;  %v336_v12 = vpack.c.bf16 %v186_v7, %v180_v6  ;;  %v179_v13 = vld [vmem:[#allocation6 + $0x240] sm:$0xff] }
  0x39   :  { %455 = vmatpush1.bf16.msra.mxu1 %v319_v51  ;;  %403 = vmatprep.subr.bf16.mxu0 %v324_v52  ;;  %v185_v14 = vld [vmem:[#allocation6 + $0x270] sm:$0xff]  ;;  %v338_v16 = vpack.c.bf16 %v188_v9, %v182_v8  ;;  %v187_v17 = vld [vmem:[#allocation6 + $0x280] sm:$0xff]  ;;  %v192_v18 = vld [vmem:[#allocation6 + $0x2a8] sm:$0xff] }
  0x3a   :  { %456 = vmatprep.subr.bf16.mxu1 %v326_v56  ;;  %v181_v15 = vld [vmem:[#allocation6 + $0x250] sm:$0xff]  ;;  %v198_v19 = vld [vmem:[#allocation6 + $0x2d8] sm:$0xff]  ;;  %v200_v21 = vld [vmem:[#allocation6 + $0x2e8] sm:$0xff]  ;;  %v335_v22 = vpack.c.bf16 %v185_v14, %v179_v13 }
  0x3b   :  { %v194_v20 = vld [vmem:[#allocation6 + $0x2b8] sm:$0xff]  ;;  %v337_v23 = vpack.c.bf16 %v187_v17, %v181_v15  ;;  %v342_v24 = vpack.c.bf16 %v198_v19, %v192_v18  ;;  %v191_v25 = vld [vmem:[#allocation6 + $0x2a0] sm:$0xff]  ;;  %v197_v26 = vld [vmem:[#allocation6 + $0x2d0] sm:$0xff] }
  0x3c   :  { %404 = vmatpush1.bf16.msra.mxu0 %v323_v62  ;;  %v193_v27 = vld [vmem:[#allocation6 + $0x2b0] sm:$0xff]  ;;  %v344_v28 = vpack.c.bf16 %v200_v21, %v194_v20  ;;  %v199_v29 = vld [vmem:[#allocation6 + $0x2e0] sm:$0xff]  ;;  %v204_v30 = vld [vmem:[#allocation6 + $0x308] sm:$0xff]  ;;  %v341_v34 = vpack.c.bf16 %v197_v26, %v191_v25 }
  0x3d   :  { %457 = vmatpush1.bf16.msra.mxu1 %v325_v63  ;;  %405 = vmatprep.subr.bf16.mxu0 %v330_v0  ;;  %v210_v31 = vld [vmem:[#allocation6 + $0x338] sm:$0xff]  ;;  %v212_v33 = vld [vmem:[#allocation6 + $0x348] sm:$0xff]  ;;  %v343_v35 = vpack.c.bf16 %v199_v29, %v193_v27  ;;  %v203_v37 = vld [vmem:[#allocation6 + $0x300] sm:$0xff] }
  0x3e   :  { %458 = vmatprep.subr.bf16.mxu1 %v332_v4  ;;  %v206_v32 = vld [vmem:[#allocation6 + $0x318] sm:$0xff]  ;;  %v348_v36 = vpack.c.bf16 %v210_v31, %v204_v30  ;;  %v209_v38 = vld [vmem:[#allocation6 + $0x330] sm:$0xff]  ;;  %v211_v41 = vld [vmem:[#allocation6 + $0x340] sm:$0xff] }
  0x3f   :  { %v205_v39 = vld [vmem:[#allocation6 + $0x310] sm:$0xff]  ;;  %v350_v40 = vpack.c.bf16 %v212_v33, %v206_v32  ;;  %v216_v42 = vld [vmem:[#allocation6 + $0x368] sm:$0xff]  ;;  %v222_v43 = vld [vmem:[#allocation6 + $0x398] sm:$0xff]  ;;  %v347_v46 = vpack.c.bf16 %v209_v38, %v203_v37 }
  0x40   :  { %406 = vmatpush1.bf16.msra.mxu0 %v329_v10  ;;  %v218_v44 = vld [vmem:[#allocation6 + $0x378] sm:$0xff]  ;;  %v224_v45 = vld [vmem:[#allocation6 + $0x3a8] sm:$0xff]  ;;  %v349_v47 = vpack.c.bf16 %v211_v41, %v205_v39  ;;  %v354_v48 = vpack.c.bf16 %v222_v43, %v216_v42  ;;  %v215_v49 = vld [vmem:[#allocation6 + $0x360] sm:$0xff] }
  0x41   :  { %459 = vmatpush1.bf16.msra.mxu1 %v331_v11  ;;  %407 = vmatprep.subr.bf16.mxu0 %v336_v12  ;;  %v221_v50 = vld [vmem:[#allocation6 + $0x390] sm:$0xff]  ;;  %v356_v52 = vpack.c.bf16 %v224_v45, %v218_v44  ;;  %v223_v53 = vld [vmem:[#allocation6 + $0x3a0] sm:$0xff]  ;;  %v228_v54 = vld [vmem:[#allocation6 + $0x3c8] sm:$0xff] }
  0x42   :  { %460 = vmatprep.subr.bf16.mxu1 %v338_v16  ;;  %v217_v51 = vld [vmem:[#allocation6 + $0x370] sm:$0xff]  ;;  %v234_v55 = vld [vmem:[#allocation6 + $0x3f8] sm:$0xff]  ;;  %v236_v57 = vld [vmem:[#allocation6 + $0x408] sm:$0xff]  ;;  %v353_v58 = vpack.c.bf16 %v221_v50, %v215_v49 }
  0x43   :  { %v230_v56 = vld [vmem:[#allocation6 + $0x3d8] sm:$0xff]  ;;  %v355_v59 = vpack.c.bf16 %v223_v53, %v217_v51  ;;  %v360_v60 = vpack.c.bf16 %v234_v55, %v228_v54  ;;  %v227_v61 = vld [vmem:[#allocation6 + $0x3c0] sm:$0xff]  ;;  %v233_v62 = vld [vmem:[#allocation6 + $0x3f0] sm:$0xff] }
  0x44   :  { %408 = vmatpush1.bf16.msra.mxu0 %v335_v22  ;;  %v229_v63 = vld [vmem:[#allocation6 + $0x3d0] sm:$0xff]  ;;  %v362_v0 = vpack.c.bf16 %v236_v57, %v230_v56  ;;  %v235_v1 = vld [vmem:[#allocation6 + $0x400] sm:$0xff]  ;;  %v240_v2 = vld [vmem:[#allocation6 + $0x428] sm:$0xff]  ;;  %v359_v6 = vpack.c.bf16 %v233_v62, %v227_v61 }
  0x45   :  { %461 = vmatpush1.bf16.msra.mxu1 %v337_v23  ;;  %409 = vmatprep.subr.bf16.mxu0 %v342_v24  ;;  %v246_v3 = vld [vmem:[#allocation6 + $0x458] sm:$0xff]  ;;  %v248_v5 = vld [vmem:[#allocation6 + $0x468] sm:$0xff]  ;;  %v239_v7 = vld [vmem:[#allocation6 + $0x420] sm:$0xff]  ;;  %v361_v8 = vpack.c.bf16 %v235_v1, %v229_v63 }
  0x46   :  { %462 = vmatprep.subr.bf16.mxu1 %v344_v28  ;;  %v242_v4 = vld [vmem:[#allocation6 + $0x438] sm:$0xff]  ;;  %v366_v9 = vpack.c.bf16 %v246_v3, %v240_v2  ;;  %v245_v10 = vld [vmem:[#allocation6 + $0x450] sm:$0xff]  ;;  %v247_v12 = vld [vmem:[#allocation6 + $0x460] sm:$0xff] }
  0x47   :  { %v241_v11 = vld [vmem:[#allocation6 + $0x430] sm:$0xff]  ;;  %v368_v13 = vpack.c.bf16 %v248_v5, %v242_v4  ;;  %v252_v14 = vld [vmem:[#allocation6 + $0x488] sm:$0xff]  ;;  %v258_v15 = vld [vmem:[#allocation6 + $0x4b8] sm:$0xff]  ;;  %v365_v20 = vpack.c.bf16 %v245_v10, %v239_v7 }
  0x48   :  { %410 = vmatpush1.bf16.msra.mxu0 %v341_v34  ;;  %v96_v16 = vld [vmem:[#allocation3 + $0x8] sm:$0xff]  ;;  %v254_v17 = vld [vmem:[#allocation6 + $0x498] sm:$0xff]  ;;  %v367_v22 = vpack.c.bf16 %v247_v12, %v241_v11  ;;  %v372_v23 = vpack.c.bf16 %v258_v15, %v252_v14  ;;  %v251_v24 = vld [vmem:[#allocation6 + $0x480] sm:$0xff] }
  0x49   :  { %463 = vmatpush1.bf16.msra.mxu1 %v343_v35  ;;  %411 = vmatprep.subr.bf16.mxu0 %v348_v36  ;;  %v260_v18 = vld [vmem:[#allocation6 + $0x4c8] sm:$0xff]  ;;  %v98_v19 = vld [vmem:[#allocation3 + $0x18] sm:$0xff]  ;;  %v257_v25 = vld [vmem:[#allocation6 + $0x4b0] sm:$0xff] }
  0x4a   :  { %464 = vmatprep.subr.bf16.mxu1 %v350_v40  ;;  %v892_v21 = vpack.c.bf16 %v98_v19, %v96_v16  ;;  %v253_v26 = vld [vmem:[#allocation6 + $0x490] sm:$0xff]  ;;  %v374_v27 = vpack.c.bf16 %v260_v18, %v254_v17  ;;  %v259_v28 = vld [vmem:[#allocation6 + $0x4c0] sm:$0xff]  ;;  %v264_v29 = vld [vmem:[#allocation6 + $0x4e8] sm:$0xff]  ;;  %v371_v33 = vpack.c.bf16 %v257_v25, %v251_v24 }
  0x4b   :  { %v270_v30 = vld [vmem:[#allocation6 + $0x518] sm:$0xff]  ;;  %v272_v32 = vld [vmem:[#allocation6 + $0x528] sm:$0xff]  ;;  %v373_v34 = vpack.c.bf16 %v259_v28, %v253_v26  ;;  %v263_v36 = vld [vmem:[#allocation6 + $0x4e0] sm:$0xff] }
  0x4c   :  { %412 = vmatpush1.bf16.msra.mxu0 %v347_v46  ;;  %427 = vmatprep.mubr.bf16.mxu0 %v892_v21  ;;  %v266_v31 = vld [vmem:[#allocation6 + $0x4f8] sm:$0xff]  ;;  %v378_v35 = vpack.c.bf16 %v270_v30, %v264_v29  ;;  %v269_v37 = vld [vmem:[#allocation6 + $0x510] sm:$0xff]  ;;  %v271_v40 = vld [vmem:[#allocation6 + $0x520] sm:$0xff] }
  0x4d   :  { %465 = vmatpush1.bf16.msra.mxu1 %v349_v47  ;;  %413 = vmatprep.subr.bf16.mxu0 %v354_v48  ;;  %v265_v38 = vld [vmem:[#allocation6 + $0x4f0] sm:$0xff]  ;;  %v380_v39 = vpack.c.bf16 %v272_v32, %v266_v31  ;;  %v276_v41 = vld [vmem:[#allocation6 + $0x548] sm:$0xff]  ;;  %v282_v42 = vld [vmem:[#allocation6 + $0x578] sm:$0xff]  ;;  %v377_v45 = vpack.c.bf16 %v269_v37, %v263_v36 }
  0x4e   :  { %466 = vmatprep.subr.bf16.mxu1 %v356_v52  ;;  %480 = vmatprep.mubr.bf16.mxu1 %v892_v21  ;;  %v278_v43 = vld [vmem:[#allocation6 + $0x558] sm:$0xff]  ;;  %v284_v44 = vld [vmem:[#allocation6 + $0x588] sm:$0xff]  ;;  %v379_v46 = vpack.c.bf16 %v271_v40, %v265_v38  ;;  %v384_v47 = vpack.c.bf16 %v282_v42, %v276_v41  ;;  %v275_v48 = vld [vmem:[#allocation6 + $0x540] sm:$0xff] }
  0x4f   :  { %v281_v49 = vld [vmem:[#allocation6 + $0x570] sm:$0xff]  ;;  %v386_v51 = vpack.c.bf16 %v284_v44, %v278_v43  ;;  %v283_v52 = vld [vmem:[#allocation6 + $0x580] sm:$0xff]  ;;  %v288_v53 = vld [vmem:[#allocation6 + $0x5a8] sm:$0xff] }
  0x50   :  { %414 = vmatpush1.bf16.msra.mxu0 %v353_v58  ;;  %v277_v50 = vld [vmem:[#allocation6 + $0x550] sm:$0xff]  ;;  %v294_v54 = vld [vmem:[#allocation6 + $0x5d8] sm:$0xff]  ;;  %v296_v56 = vld [vmem:[#allocation6 + $0x5e8] sm:$0xff]  ;;  %v383_v57 = vpack.c.bf16 %v281_v49, %v275_v48 }
  0x51   :  { %467 = vmatpush1.bf16.msra.mxu1 %v355_v59  ;;  %415 = vmatprep.subr.bf16.mxu0 %v360_v60  ;;  %v290_v55 = vld [vmem:[#allocation6 + $0x5b8] sm:$0xff]  ;;  %v385_v58 = vpack.c.bf16 %v283_v52, %v277_v50  ;;  %v390_v59 = vpack.c.bf16 %v294_v54, %v288_v53  ;;  %v287_v60 = vld [vmem:[#allocation6 + $0x5a0] sm:$0xff]  ;;  %v293_v61 = vld [vmem:[#allocation6 + $0x5d0] sm:$0xff] }
  0x52   :  { %468 = vmatprep.subr.bf16.mxu1 %v362_v0  ;;  %v289_v62 = vld [vmem:[#allocation6 + $0x5b0] sm:$0xff]  ;;  %v392_v63 = vpack.c.bf16 %v296_v56, %v290_v55  ;;  %v295_v0 = vld [vmem:[#allocation6 + $0x5e0] sm:$0xff]  ;;  %v112_v1 = vld [vmem:[#allocation6 + $0x28] sm:$0xff]  ;;  %v389_v3 = vpack.c.bf16 %v293_v61, %v287_v60 }
  0x53   :  { %v118_v2 = vld [vmem:[#allocation6 + $0x58] sm:$0xff]  ;;  %v95_v4 = vld [vmem:[#allocation3] sm:$0xff]  ;;  %v97_v5 = vld [vmem:[#allocation3 + $0x10] sm:$0xff] }
  0x54   :  { %416 = vmatpush1.bf16.msra.mxu0 %v359_v6  ;;  %v391_v6 = vpack.c.bf16 %v295_v0, %v289_v62  ;;  %v304_v7 = vpack.c.bf16 %v118_v2, %v112_v1  ;;  %v124_v10 = vld [vmem:[#allocation6 + $0x88] sm:$0xff]  ;;  %v130_v11 = vld [vmem:[#allocation6 + $0xb8] sm:$0xff]  ;;  %v896_v12 = vpack.c.bf16 %v97_v5, %v95_v4  ;;  %v123_v17 = vld [vmem:[#allocation6 + $0x80] sm:$0xff] }
  0x55   :  { %469 = vmatpush1.bf16.msra.mxu1 %v361_v8  ;;  %417 = vmatprep.subr.bf16.mxu0 %v366_v9  ;;  %v111_v8 = vld [vmem:[#allocation6 + $0x20] sm:$0xff]  ;;  %v117_v9 = vld [vmem:[#allocation6 + $0x50] sm:$0xff]  ;;  %v102_v14 = vld [vmem:[#allocation3 + $0x38] sm:$0xff]  ;;  %v310_v16 = vpack.c.bf16 %v130_v11, %v124_v10 }
  0x56   :  { %470 = vmatprep.subr.bf16.mxu1 %v368_v13  ;;  %v100_v13 = vld [vmem:[#allocation3 + $0x28] sm:$0xff]  ;;  %v303_v15 = vpack.c.bf16 %v117_v9, %v111_v8  ;;  %v129_v18 = vld [vmem:[#allocation6 + $0xb0] sm:$0xff]  ;;  %v99_v24 = vld [vmem:[#allocation3 + $0x20] sm:$0xff] }
  0x57   :  { %v136_v19 = vld [vmem:[#allocation6 + $0xe8] sm:$0xff]  ;;  %v101_v25 = vld [vmem:[#allocation3 + $0x30] sm:$0xff]  ;;  %v154_v30 = vld [vmem:[#allocation6 + $0x178] sm:$0xff] }
  0x58   :  { %418 = vmatpush1.bf16.msra.mxu0 %v365_v20  ;;  %v142_v20 = vld [vmem:[#allocation6 + $0x118] sm:$0xff]  ;;  %v141_v28 = vld [vmem:[#allocation6 + $0x110] sm:$0xff]  ;;  %v148_v29 = vld [vmem:[#allocation6 + $0x148] sm:$0xff]  ;;  %v900_v31 = vpack.c.bf16 %v101_v25, %v99_v24 }
  0x59   :  { %471 = vmatpush1.bf16.msra.mxu1 %v367_v22  ;;  %419 = vmatprep.subr.bf16.mxu0 %v372_v23  ;;  %v106_v22 = vpack.c.bf16 %v102_v14, %v100_v13  ;;  %v309_v23 = vpack.c.bf16 %v129_v18, %v123_v17  ;;  %v316_v26 = vpack.c.bf16 %v142_v20, %v136_v19  ;;  %v160_v36 = vld [vmem:[#allocation6 + $0x1a8] sm:$0xff]  ;;  %v166_v37 = vld [vmem:[#allocation6 + $0x1d8] sm:$0xff]  ;;  %v159_v40 = vld [vmem:[#allocation6 + $0x1a0] sm:$0xff] }
  0x5a   :  { %472 = vmatprep.subr.bf16.mxu1 %v374_v27  ;;  %v135_v27 = vld [vmem:[#allocation6 + $0xe0] sm:$0xff]  ;;  %v165_v41 = vld [vmem:[#allocation6 + $0x1d0] sm:$0xff]  ;;  %v172_v42 = vld [vmem:[#allocation6 + $0x208] sm:$0xff] }
  0x5b   :  { %v315_v32 = vpack.c.bf16 %v141_v28, %v135_v27  ;;  %v178_v43 = vld [vmem:[#allocation6 + $0x238] sm:$0xff]  ;;  %v327_v44 = vpack.c.bf16 %v165_v41, %v159_v40  ;;  %v184_v48 = vld [vmem:[#allocation6 + $0x268] sm:$0xff]  ;;  %v183_v52 = vld [vmem:[#allocation6 + $0x260] sm:$0xff] }
  0x5c   :  { %420 = vmatpush1.bf16.msra.mxu0 %v371_v33  ;;  %v322_v33 = vpack.c.bf16 %v154_v30, %v148_v29  ;;  %v190_v49 = vld [vmem:[#allocation6 + $0x298] sm:$0xff]  ;;  %v189_v53 = vld [vmem:[#allocation6 + $0x290] sm:$0xff]  ;;  %v220_v1 = vld [vmem:[#allocation6 + $0x388] sm:$0xff] }
  0x5d   :  { %473 = vmatpush1.bf16.msra.mxu1 %v373_v34  ;;  %421 = vmatprep.subr.bf16.mxu0 %v378_v35  ;;  %v147_v34 = vld [vmem:[#allocation6 + $0x140] sm:$0xff]  ;;  %v153_v35 = vld [vmem:[#allocation6 + $0x170] sm:$0xff]  ;;  %v202_v54 = vld [vmem:[#allocation6 + $0x2f8] sm:$0xff]  ;;  %v339_v55 = vpack.c.bf16 %v189_v53, %v183_v52 }
  0x5e   :  { %474 = vmatprep.subr.bf16.mxu1 %v380_v39  ;;  %v321_v38 = vpack.c.bf16 %v153_v35, %v147_v34  ;;  %v328_v39 = vpack.c.bf16 %v166_v37, %v160_v36  ;;  %v214_v60 = vld [vmem:[#allocation6 + $0x358] sm:$0xff]  ;;  %v213_v0 = vld [vmem:[#allocation6 + $0x350] sm:$0xff]  ;;  %v219_v5 = vld [vmem:[#allocation6 + $0x380] sm:$0xff] }
  0x5f   :  { %v226_v2 = vld [vmem:[#allocation6 + $0x3b8] sm:$0xff]  ;;  %v231_v11 = vld [vmem:[#allocation6 + $0x3e0] sm:$0xff]  ;;  %v237_v13 = vld [vmem:[#allocation6 + $0x410] sm:$0xff] }
  0x60   :  { %422 = vmatpush1.bf16.msra.mxu0 %v377_v45  ;;  %v334_v45 = vpack.c.bf16 %v178_v43, %v172_v42  ;;  %v358_v4 = vpack.c.bf16 %v226_v2, %v220_v1  ;;  %v238_v8 = vld [vmem:[#allocation6 + $0x418] sm:$0xff]  ;;  %v244_v14 = vld [vmem:[#allocation6 + $0x448] sm:$0xff]  ;;  %v243_v18 = vld [vmem:[#allocation6 + $0x440] sm:$0xff] }
  0x61   :  { %475 = vmatpush1.bf16.msra.mxu1 %v379_v46  ;;  %423 = vmatprep.subr.bf16.mxu0 %v384_v47  ;;  %v171_v46 = vld [vmem:[#allocation6 + $0x200] sm:$0xff]  ;;  %v177_v47 = vld [vmem:[#allocation6 + $0x230] sm:$0xff]  ;;  %v256_v20 = vld [vmem:[#allocation6 + $0x4a8] sm:$0xff] }
  0x62   :  { %476 = vmatprep.subr.bf16.mxu1 %v386_v51  ;;  %v333_v50 = vpack.c.bf16 %v177_v47, %v171_v46  ;;  %v340_v51 = vpack.c.bf16 %v190_v49, %v184_v48  ;;  %v249_v19 = vld [vmem:[#allocation6 + $0x470] sm:$0xff]  ;;  %v255_v25 = vld [vmem:[#allocation6 + $0x4a0] sm:$0xff]  ;;  %v268_v27 = vld [vmem:[#allocation6 + $0x508] sm:$0xff]  ;;  %v631_v47 = vlaneseq }
  0x63   :  { %v274_v28 = vld [vmem:[#allocation6 + $0x538] sm:$0xff]  ;;  %v280_v34 = vld [vmem:[#allocation6 + $0x568] sm:$0xff] }
  0x64   :  { %424 = vmatpush1.bf16.msra.mxu0 %v383_v57  ;;  %v195_v57 = vld [vmem:[#allocation6 + $0x2c0] sm:$0xff]  ;;  %v382_v30 = vpack.c.bf16 %v274_v28, %v268_v27  ;;  %v286_v35 = vld [vmem:[#allocation6 + $0x598] sm:$0xff]  ;;  %v292_v40 = vld [vmem:[#allocation6 + $0x5c8] sm:$0xff]  ;;  %v632_v48 = vshrl.u32 %v631_v47, 7 }
  0x65   :  { %477 = vmatpush1.bf16.msra.mxu1 %v385_v58  ;;  %425 = vmatprep.subr.bf16.mxu0 %v390_v59  ;;  %v201_v58 = vld [vmem:[#allocation6 + $0x2f0] sm:$0xff]  ;;  %v208_v59 = vld [vmem:[#allocation6 + $0x328] sm:$0xff]  ;;  %v388_v37 = vpack.c.bf16 %v286_v35, %v280_v34  ;;  %v298_v41 = vld [vmem:[#allocation6 + $0x5f8] sm:$0xff] }
  0x66   :  { %478 = vmatprep.subr.bf16.mxu1 %v392_v63  ;;  %v345_v61 = vpack.c.bf16 %v201_v58, %v195_v57  ;;  %v352_v62 = vpack.c.bf16 %v214_v60, %v208_v59  ;;  %v207_v63 = vld [vmem:[#allocation6 + $0x320] sm:$0xff]  ;;  %v394_v43 = vpack.c.bf16 %v298_v41, %v292_v40  ;;  %v649_v49 = vsub.s32 4, %v632_v48 }
  0x68   :  { %426 = vmatpush1.bf16.msra.mxu0 %v389_v3  ;;  %v351_v3 = vpack.c.bf16 %v213_v0, %v207_v63 }
  0x69   :  { %479 = vmatpush1.bf16.msra.mxu1 %v391_v6  ;;  %501 = vmatprep.subr.bf16.mxu0 %v304_v7  ;;  %v225_v6 = vld [vmem:[#allocation6 + $0x3b0] sm:$0xff] }
  0x6a   :  { %727 = vmatprep.subr.bf16.mxu1 %v304_v7  ;;  %v232_v7 = vld [vmem:[#allocation6 + $0x3e8] sm:$0xff]  ;;  %v357_v9 = vpack.c.bf16 %v225_v6, %v219_v5 }
  0x6b   :  { %428 = vmatmul.mubr.bf16.vlgmr.msra.gmra.mrb[0].mxu0 %v896_v12  ;;  %v364_v10 = vpack.c.bf16 %v238_v8, %v232_v7 }
  0x6c   :  { %481 = vmatmul.mubr.bf16.vlgmr.msra.gmra.mrb[0].mxu1 %v896_v12  ;;  %502 = vmatpush1.bf16.msra.mxu0 %v303_v15 }
  0x6d   :  { %743 = vmatpush1.bf16.msra.mxu1 %v303_v15  ;;  %503 = vmatprep.subr.bf16.mxu0 %v310_v16  ;;  %v250_v15 = vld [vmem:[#allocation6 + $0x478] sm:$0xff] }
  0x6e   :  { %728 = vmatprep.subr.bf16.mxu1 %v310_v16  ;;  %437 = vmatprep.mubr.bf16.mxu0 %v106_v22  ;;  %v363_v16 = vpack.c.bf16 %v237_v13, %v231_v11  ;;  %v370_v17 = vpack.c.bf16 %v250_v15, %v244_v14 }
  0x6f   :  { %490 = vmatprep.mubr.bf16.mxu1 %v106_v22 }
  0x70   :  { %504 = vmatpush1.bf16.msra.mxu0 %v309_v23 }
  0x71   :  { %744 = vmatpush1.bf16.msra.mxu1 %v309_v23  ;;  %505 = vmatprep.subr.bf16.mxu0 %v316_v26  ;;  %v369_v23 = vpack.c.bf16 %v249_v19, %v243_v18 }
  0x72   :  { %729 = vmatprep.subr.bf16.mxu1 %v316_v26  ;;  %v261_v26 = vld [vmem:[#allocation6 + $0x4d0] sm:$0xff] }
  0x73   :  { %438 = vmatmul.mubr.bf16.gmra.mrb[4].mxu0 %v900_v31  ;;  %v375_v29 = vpack.c.bf16 %v261_v26, %v255_v25 }
  0x74   :  { %506 = vmatpush1.bf16.msra.mxu0 %v315_v32  ;;  %491 = vmatmul.mubr.bf16.gmra.mrb[4].mxu1 %v900_v31 }
  0x75   :  { %745 = vmatpush1.bf16.msra.mxu1 %v315_v32  ;;  %507 = vmatprep.subr.bf16.mxu0 %v322_v33  ;;  %v267_v32 = vld [vmem:[#allocation6 + $0x500] sm:$0xff] }
  0x76   :  { %730 = vmatprep.subr.bf16.mxu1 %v322_v33  ;;  %533 = vmatprep.mubr.bf16.mxu0 %v892_v21  ;;  %v196_v21 = vld [vmem:[#allocation6 + $0x2c8] sm:$0xff]  ;;  %v273_v33 = vld [vmem:[#allocation6 + $0x530] sm:$0xff] }
  0x77   :  { %543 = vmatprep.mubr.bf16.mxu1 %v106_v22  ;;  %v346_v56 = vpack.c.bf16 %v202_v54, %v196_v21  ;;  %v262_v22 = vld [vmem:[#allocation6 + $0x4d8] sm:$0xff]  ;;  %v381_v36 = vpack.c.bf16 %v273_v33, %v267_v32  ;;  %v633_v21 = vsub.s32 0, %v632_v48  ;;  %v641_v54 = vsub.s32 2, %v632_v48 }
  0x78   :  { %508 = vmatpush1.bf16.msra.mxu0 %v321_v38  ;;  %v376_v24 = vpack.c.bf16 %v262_v22, %v256_v20 }
  0x79   :  { %746 = vmatpush1.bf16.msra.mxu1 %v321_v38  ;;  %509 = vmatprep.subr.bf16.mxu0 %v328_v39  ;;  %v279_v38 = vld [vmem:[#allocation6 + $0x560] sm:$0xff] }
  0x7a   :  { %731 = vmatprep.subr.bf16.mxu1 %v328_v39  ;;  %v285_v39 = vld [vmem:[#allocation6 + $0x590] sm:$0xff] }
  0x7b   :  { %v387_v42 = vpack.c.bf16 %v285_v39, %v279_v38 }
  0x7c   :  { %510 = vmatpush1.bf16.msra.mxu0 %v327_v44 }
  0x7d   :  { %747 = vmatpush1.bf16.msra.mxu1 %v327_v44  ;;  %511 = vmatprep.subr.bf16.mxu0 %v334_v45  ;;  %v291_v44 = vld [vmem:[#allocation6 + $0x5c0] sm:$0xff] }
  0x7e   :  { %732 = vmatprep.subr.bf16.mxu1 %v334_v45  ;;  %v297_v45 = vld [vmem:[#allocation6 + $0x5f0] sm:$0xff] }
  0x7f   :  { %v393_v46 = vpack.c.bf16 %v297_v45, %v291_v44 }
  0x80   :  { %512 = vmatpush1.bf16.msra.mxu0 %v333_v50 }
  0x81   :  { %748 = vmatpush1.bf16.msra.mxu1 %v333_v50  ;;  %513 = vmatprep.subr.bf16.mxu0 %v340_v51  ;;  %v629_v50 = vld [vmem:[%s939_s2] sm:$0x3f]  ;;  %s844_s2 = smov [#allocation8]  }
  0x82   :  { %733 = vmatprep.subr.bf16.mxu1 %v340_v51  ;;  %v653_v51 = vsub.s32 5, %v632_v48  ;;  %v910_v52 = vrot.slane %v629_v50, %v649_v49  ;;  %v634_v57 = vrot.slane %v629_v50, %v633_v21  ;;  %s714_s13 = sshll.u32 %s844_s2, 4  ;;  %s715_s13 = int_to_ptr.vmem [resolvable:$true] %s714_s13 }
  0x83   :  { %s810_s14 = scalar_lea.vmem %s715_s13, 3072  ;;  %p815_p3 = scmp.lt.s32.totalorder %s715_s13, %s715_s13 }
  0x84   :  { %514 = vmatpush1.bf16.msra.mxu0 %v339_v55  ;;  %v912_v53 = vrot.slane %v629_v50, %v653_v51  ;;  %p811_p2 = scmp.ne.s32.totalorder %s715_s13, %s810_s14  ;;  %p816_p4 = scmp.lt.s32.totalorder %s810_s14, %s810_s14 }
  0x85   :  { %749 = vmatpush1.bf16.msra.mxu1 %v339_v55  ;;  %515 = vmatprep.subr.bf16.mxu0 %v346_v56  ;;  %v637_v55 = vsub.s32 1, %v632_v48 }
  0x86   :  { %734 = vmatprep.subr.bf16.mxu1 %v346_v56  ;;  %v645_v56 = vsub.s32 3, %v632_v48  ;;  %p817_p5 = por %p816_p4, %p815_p3 }
  0x87   :  { %v638_v58 = vrot.slane %v629_v50, %v637_v55 }
  0x88   :  { %516 = vmatpush1.bf16.msra.mxu0 %v345_v61  ;;  %p818_p6 = pnand %p817_p5, %p811_p2 }
  0x89   :  { %750 = vmatpush1.bf16.msra.mxu1 %v345_v61  ;;  %517 = vmatprep.subr.bf16.mxu0 %v352_v62 }
  0x8a   :  { %735 = vmatprep.subr.bf16.mxu1 %v352_v62 }
  0x8c   :  { %518 = vmatpush1.bf16.msra.mxu0 %v351_v3 }
  0x8d   :  { %751 = vmatpush1.bf16.msra.mxu1 %v351_v3  ;;  %519 = vmatprep.subr.bf16.mxu0 %v358_v4 }
  0x8e   :  { %736 = vmatprep.subr.bf16.mxu1 %v358_v4 }
  0x90   :  { %520 = vmatpush1.bf16.msra.mxu0 %v357_v9 }
  0x91   :  { %752 = vmatpush1.bf16.msra.mxu1 %v357_v9  ;;  %521 = vmatprep.subr.bf16.mxu0 %v364_v10 }
  0x92   :  { %737 = vmatprep.subr.bf16.mxu1 %v364_v10 }
  0x94   :  { %522 = vmatpush1.bf16.msra.mxu0 %v363_v16 }
  0x95   :  { %753 = vmatpush1.bf16.msra.mxu1 %v363_v16  ;;  %523 = vmatprep.subr.bf16.mxu0 %v370_v17 }
  0x96   :  { %738 = vmatprep.subr.bf16.mxu1 %v370_v17 }
  0x98   :  { %524 = vmatpush1.bf16.msra.mxu0 %v369_v23 }
  0x99   :  { %754 = vmatpush1.bf16.msra.mxu1 %v369_v23  ;;  %525 = vmatprep.subr.bf16.mxu0 %v376_v24 }
  0x9a   :  { %739 = vmatprep.subr.bf16.mxu1 %v376_v24 }
  0x9c   :  { %526 = vmatpush1.bf16.msra.mxu0 %v375_v29 }
  0x9d   :  { %755 = vmatpush1.bf16.msra.mxu1 %v375_v29  ;;  %527 = vmatprep.subr.bf16.mxu0 %v382_v30 }
  0x9e   :  { %740 = vmatprep.subr.bf16.mxu1 %v382_v30 }
  0xa0   :  { %528 = vmatpush1.bf16.msra.mxu0 %v381_v36 }
  0xa1   :  { %756 = vmatpush1.bf16.msra.mxu1 %v381_v36  ;;  %529 = vmatprep.subr.bf16.mxu0 %v388_v37 }
  0xa2   :  { %741 = vmatprep.subr.bf16.mxu1 %v388_v37 }
  0xa4   :  { %530 = vmatpush1.bf16.msra.mxu0 %v387_v42 }
  0xa5   :  { %757 = vmatpush1.bf16.msra.mxu1 %v387_v42  ;;  %531 = vmatprep.subr.bf16.mxu0 %v394_v43 }
  0xa6   :  { %742 = vmatprep.subr.bf16.mxu1 %v394_v43 }
  0xa8   :  { %532 = vmatpush1.bf16.msra.mxu0 %v393_v46 }
  0xa9   :  { %758 = vmatpush1.bf16.msra.mxu1 %v393_v46 }
  0xab   :  { %534 = vmatmul.mubr.bf16.vlgmr.msra.gmra.mrb[8].mxu0 %v896_v12  ;;  %v642_v12 = vrot.slane %v629_v50, %v641_v54 }
  0xac   :  { %544 = vmatmul.mubr.bf16.vlgmr.msra.gmra.mrb[8].mxu1 %v900_v31  ;;  %v646_v31 = vrot.slane %v629_v50, %v645_v56 }
 0x13e   :  { %v429_v59 = vpop.f32.mrb[0].mxu0 }
 0x13f   :  { %v661_v60 = vadd.f32 %v634_v57, %v429_v59  ;;  %v482_v61 = vpop.f32.mrb[0].mxu1  ;;  %v431_v62 = vpop.f32.mrb[1].mxu0 }
 0x140   :  { %v663_v63 = vadd.f32 %v642_v12, %v482_v61  ;;  %v662_v0 = vadd.f32 %v638_v58, %v431_v62  ;;  %v484_v1 = vpop.f32.mrb[1].mxu1  ;;  %v433_v2 = vpop.f32.mrb[2].mxu0 }
 0x141   :  { %685 = vst [vmem:[#allocation8] sm:$0xff] %v661_v60  ;;  %v664_v3 = vadd.f32 %v646_v31, %v484_v1  ;;  %v667_v4 = vadd.f32 %v634_v57, %v433_v2  ;;  %v486_v5 = vpop.f32.mrb[2].mxu1  ;;  %v435_v6 = vpop.f32.mrb[3].mxu0 }
 0x142   :  { %687 = vst [vmem:[#allocation8 + $0x10] sm:$0xff] %v663_v63  ;;  %686 = vst [vmem:[#allocation8 + $0x8] sm:$0xff] %v662_v0  ;;  %v669_v7 = vadd.f32 %v642_v12, %v486_v5  ;;  %v668_v8 = vadd.f32 %v638_v58, %v435_v6  ;;  %v488_v9 = vpop.f32.mrb[3].mxu1 }
 0x143   :  { %688 = vst [vmem:[#allocation8 + $0x18] sm:$0xff] %v664_v3  ;;  %691 = vst [vmem:[#allocation8 + $0x30] sm:$0xff] %v667_v4  ;;  %v670_v10 = vadd.f32 %v646_v31, %v488_v9 }
 0x144   :  { %693 = vst [vmem:[#allocation8 + $0x40] sm:$0xff] %v669_v7  ;;  %692 = vst [vmem:[#allocation8 + $0x38] sm:$0xff] %v668_v8 }
 0x145   :  { %694 = vst [vmem:[#allocation8 + $0x48] sm:$0xff] %v670_v10 }
 0x146   :  { %v439_v11 = vpop.f32.mrb[4].mxu0 }
 0x147   :  { %v673_v13 = vadd.f32 %v634_v57, %v439_v11  ;;  %v492_v14 = vpop.f32.mrb[4].mxu1  ;;  %v441_v15 = vpop.f32.mrb[5].mxu0 }
 0x148   :  { %v675_v16 = vadd.f32 %v642_v12, %v492_v14  ;;  %v674_v17 = vadd.f32 %v638_v58, %v441_v15  ;;  %v494_v18 = vpop.f32.mrb[5].mxu1  ;;  %v443_v19 = vpop.f32.mrb[6].mxu0 }
 0x149   :  { %697 = vst [vmem:[#allocation8 + $0x60] sm:$0xff] %v673_v13  ;;  %v676_v20 = vadd.f32 %v646_v31, %v494_v18  ;;  %v679_v22 = vadd.f32 %v634_v57, %v443_v19  ;;  %v496_v23 = vpop.f32.mrb[6].mxu1  ;;  %v445_v24 = vpop.f32.mrb[7].mxu0 }
 0x14a   :  { %699 = vst [vmem:[#allocation8 + $0x70] sm:$0xff] %v675_v16  ;;  %698 = vst [vmem:[#allocation8 + $0x68] sm:$0xff] %v674_v17  ;;  %v681_v25 = vadd.f32 %v642_v12, %v496_v23  ;;  %v680_v26 = vadd.f32 %v638_v58, %v445_v24  ;;  %v498_v27 = vpop.f32.mrb[7].mxu1 }
 0x14b   :  { %700 = vst [vmem:[#allocation8 + $0x78] sm:$0xff] %v676_v20  ;;  %703 = vst [vmem:[#allocation8 + $0x90] sm:$0xff] %v679_v22  ;;  %v682_v28 = vadd.f32 %v646_v31, %v498_v27 }
 0x14c   :  { %705 = vst [vmem:[#allocation8 + $0xa0] sm:$0xff] %v681_v25  ;;  %704 = vst [vmem:[#allocation8 + $0x98] sm:$0xff] %v680_v26 }
 0x14d   :  { %706 = vst [vmem:[#allocation8 + $0xa8] sm:$0xff] %v682_v28 }
 0x17e   :  { %v535_v29 = vpop.f32.mrb[8].mxu0 }
 0x17f   :  { %v665_v30 = vadd.f32 %v910_v52, %v535_v29  ;;  %v545_v32 = vpop.f32.mrb[8].mxu1  ;;  %v537_v33 = vpop.f32.mrb[9].mxu0 }
 0x180   :  { %v677_v34 = vadd.f32 %v910_v52, %v545_v32  ;;  %v666_v35 = vadd.f32 %v912_v53, %v537_v33  ;;  %v547_v36 = vpop.f32.mrb[9].mxu1  ;;  %v539_v37 = vpop.f32.mrb[10].mxu0 }
 0x181   :  { %689 = vst [vmem:[#allocation8 + $0x20] sm:$0xff] %v665_v30  ;;  %v678_v38 = vadd.f32 %v912_v53, %v547_v36  ;;  %v671_v39 = vadd.f32 %v910_v52, %v539_v37  ;;  %v549_v40 = vpop.f32.mrb[10].mxu1  ;;  %v541_v41 = vpop.f32.mrb[11].mxu0 }
 0x182   :  { %701 = vst [vmem:[#allocation8 + $0x80] sm:$0xff] %v677_v34  ;;  %690 = vst [vmem:[#allocation8 + $0x28] sm:$0xff] %v666_v35  ;;  %v683_v42 = vadd.f32 %v910_v52, %v549_v40  ;;  %v672_v43 = vadd.f32 %v912_v53, %v541_v41  ;;  %v551_v44 = vpop.f32.mrb[11].mxu1 }
 0x183   :  { %702 = vst [vmem:[#allocation8 + $0x88] sm:$0xff] %v678_v38  ;;  %695 = vst [vmem:[#allocation8 + $0x50] sm:$0xff] %v671_v39  ;;  %v684_v45 = vadd.f32 %v912_v53, %v551_v44 }
 0x184   :  { %707 = vst [vmem:[#allocation8 + $0xb0] sm:$0xff] %v683_v42  ;;  %696 = vst [vmem:[#allocation8 + $0x58] sm:$0xff] %v672_v43 }
 0x185   :  { %708 = vst [vmem:[#allocation8 + $0xb8] sm:$0xff] %v684_v45 }
 0x186   :  { %821 = shalt.err (!%p818_p6)
}
 0x187   :  { %s822_s17 = scalar_lea.hbm %s940_s3, 3072 }
 0x188   :  { %p823_p7 = scmp.ne.s32.totalorder %s940_s3, %s822_s17  ;;  %p826_p8 = scmp.lt.u32.totalorder %s822_s17, %s940_s3 }
 0x18a   :  { %p828_p9 = pnand %p826_p8, %p823_p7 }
 0x18c   :  { %831 = shalt.err (!%p828_p9)
}
 0x18d   :  { %720 = dma.vmem_to_hbm [thread:$0]  %s715_s13, 3072, %s940_s3, [#allocation5], %s842_s0, %s842_s0, %s843_s9  }
 0x18e   :  { %836 = dma.done.wait [#allocation5], 3072  }
 0x18f   :  { %837 = vsyncadd [#allocation5], 4294964224 }
 0x190   :  { %724 = vsyncpa [#allocation4], 1 }
 0x191   :  { %725 = vsyncpa [#allocation7], 1 }
 0x192   :  { %726 = vsyncpa [#allocation5], 1 }

</bundles_post_ra>
